<compile_context>
chip_gen: v5e
topology: v5e:2x2
jax: 0.10.0
libtpu: 0.0.40
codegen_flags: <defaults>
</compile_context>

<pallas_src>
import jax
import jax.numpy as jnp
from jax.experimental import pallas as pl
from jax.experimental.pallas import tpu as pltpu


def _round_up(x, m):
    return ((x + m - 1) // m) * m


def _chip_params():
    """Returns (tile budget bytes, vmem_limit cap bytes, two_tensorcores)."""
    vmem_cap = None
    try:
        vmem_cap = int(pltpu.get_tpu_info().vmem_capacity_bytes)
    except Exception:
        vmem_cap = None
    if vmem_cap is not None and vmem_cap <= (96 << 20):
        # v7x-like: 64 MiB VMEM per TC, 3.2 TB/s HBM, 2 TensorCores per chip.
        return 40 << 20, 48 << 20, True
    if vmem_cap is not None:
        # v5e / v6e: 128 MiB physical VMEM, single TensorCore.
        return 48 << 20, 64 << 20, False
    # Unknown hardware: conservative numbers that are safe everywhere.
    return 24 << 20, 48 << 20, False


def _choose_tiles(B, D, in_itemsize, w_itemsize, out_itemsize, budget_bytes, two_tc):
    # Sublane multiple for packed dtypes: 8 (f32), 16 (bf16), 32 (int8/fp8).
    sub = max(8, 32 // max(1, in_itemsize))
    b_pad = max(sub, _round_up(B, sub))

    acc_row_bytes = 128 * 4  # lane-parallel f32 accumulator row (nd > 1 only)

    def max_tb_for(td):
        # Double-buffered per-step footprint:
        #   q, p: 2 inputs x 2 pipeline buffers x (tb, td)
        #   weights: 2 x (1, td); output: 2 x (tb, 1); acc scratch: (tb, 128) f32
        avail = budget_bytes - 2 * td * w_itemsize
        if avail <= 0:
            return 0
        denom = 4 * td * in_itemsize + 2 * out_itemsize + acc_row_bytes
        return (avail // denom) // sub * sub

    # ~1024 rows/step => tens of MB of q+p traffic per step for typical D,
    # amortizing the ~0.35us per-step overhead against v7x's 3.2 TB/s HBM.
    target_tb = min(1024, b_pad)

    td = D
    if max_tb_for(D) < target_tb:
        # Tile the reduction axis in multiples of 128; the lane tail of the
        # last k-step is masked in-kernel, so td does NOT have to divide D.
        num = budget_bytes - target_tb * (2 * out_itemsize + acc_row_bytes)
        den = 4 * target_tb * in_itemsize + 2 * w_itemsize
        c = (num // den) // 128 * 128 if num > 0 else 0
        td = int(min(max(128, c), _round_up(D, 128)))

    tb = min(max(sub, max_tb_for(td)), b_pad)
    tb = max(sub, (tb // sub) * sub)

    # v7x only (2 TCs): if the whole batch fits in one step, split it into two
    # equal steps so the "parallel" batch axis shards across both TensorCores.
    # On v5e/v6e this split would only double per-step overhead, so skip it.
    if two_tc and b_pad >= 2 * sub and pl.cdiv(b_pad, tb) < 2:
        tb = _round_up(pl.cdiv(b_pad, 2), sub)

    return tb, td


def _make_single_step_kernel():
    # nd == 1: no accumulator / scratch; one cross-lane reduce into the output.
    def kernel(w_ref, q_ref, p_ref, o_ref):
        prod = (
            w_ref[...].astype(jnp.float32)
            * q_ref[...].astype(jnp.float32)
            * p_ref[...].astype(jnp.float32)
        )
        o_ref[...] = jnp.sum(prod, axis=1, keepdims=True).astype(o_ref.dtype)

    return kernel


def _make_multi_step_kernel(tb, td, D, nd):
    # nd > 1: lane-parallel (tb, 128) f32 accumulator; cross-lane reduce only
    # in the epilogue. Lane tail of the last k-step masked when D % td != 0.
    n_chunks = td // 128
    needs_mask = (D % td) != 0

    def kernel(w_ref, q_ref, p_ref, o_ref, acc_ref):
        k = pl.program_id(1)

        @pl.when(k == 0)
        def _():
            acc_ref[...] = jnp.zeros_like(acc_ref)

        prod = (
            w_ref[...].astype(jnp.float32)
            * q_ref[...].astype(jnp.float32)
            * p_ref[...].astype(jnp.float32)
        )
        if needs_mask:
            lane = jax.lax.broadcasted_iota(jnp.int32, (tb, td), 1)
            limit = D - k * td  # >= td on every step except the last
            prod = jnp.where(lane < limit, prod, 0.0)

        # Fold the td/128 lane-column blocks with plain VALU adds (no XLU).
        folded = prod[:, 0:128]
        for c in range(1, n_chunks):
            folded = folded + prod[:, c * 128:(c + 1) * 128]
        acc_ref[...] += folded

        @pl.when(k == nd - 1)
        def _():
            o_ref[...] = jnp.sum(acc_ref[...], axis=1, keepdims=True).astype(o_ref.dtype)

    return kernel


def weighted_dot_product(weights, query_embed, passage_embed, *, _force_tb=None, _force_td=None):
    """weights: (D,), query_embed/passage_embed: (B, D) -> (B,)"""
    B, D = query_embed.shape
    assert passage_embed.shape == (B, D)
    assert weights.shape == (D,)

    out_dtype = query_embed.dtype
    in_itemsize = jnp.dtype(query_embed.dtype).itemsize
    w_itemsize = jnp.dtype(weights.dtype).itemsize
    out_itemsize = jnp.dtype(out_dtype).itemsize

    budget_bytes, vmem_cap_limit, two_tc = _chip_params()
    tb, td = _choose_tiles(
        B, D, in_itemsize, w_itemsize, out_itemsize, budget_bytes, two_tc
    )
    if _force_tb is not None:
        tb = _force_tb
    if _force_td is not None:
        td = _force_td

    nb = pl.cdiv(B, tb)  # ragged batch tail handled by Pallas block padding
    nd = pl.cdiv(D, td)  # lane tail of the last k-step masked in-kernel

    w2d = weights.reshape(1, D)

    acc_bytes = tb * 128 * 4 if nd > 1 else 0
    tile_bytes = (
        4 * tb * td * in_itemsize   # q, p: 2 inputs x 2 pipeline buffers
        + 2 * td * w_itemsize       # weights block (double-buffered)
        + 2 * tb * out_itemsize     # output tile (double-buffered)
        + acc_bytes                 # f32 lane-parallel accumulator scratch
    )
    # tile_bytes already includes double-buffering: ~1.4x headroom for compiler
    # scratch, hard-capped per chip generation (48 MiB on v7x, 64 MiB else).
    vmem_limit_bytes = int(min(max(int(1.4 * tile_bytes), 8 << 20), vmem_cap_limit))

    cost = pl.CostEstimate(
        flops=3 * B * D,
        transcendentals=0,
        bytes_accessed=2 * B * D * in_itemsize + D * w_itemsize + B * out_itemsize,
    )

    if nd == 1:
        kernel = _make_single_step_kernel()
        grid = (nb,)
        in_specs = [
            pl.BlockSpec((1, D), lambda i: (0, 0)),     # weights (bcast over batch)
            pl.BlockSpec((tb, D), lambda i: (i, 0)),    # query tile
            pl.BlockSpec((tb, D), lambda i: (i, 0)),    # passage tile
        ]
        out_specs = pl.BlockSpec((tb, 1), lambda i: (i, 0))
        scratch_shapes = []
        dim_sem = ("parallel",)
    else:
        kernel = _make_multi_step_kernel(tb, td, D, nd)
        grid = (nb, nd)
        in_specs = [
            pl.BlockSpec((1, td), lambda i, k: (0, k)),
            pl.BlockSpec((tb, td), lambda i, k: (i, k)),
            pl.BlockSpec((tb, td), lambda i, k: (i, k)),
        ]
        out_specs = pl.BlockSpec((tb, 1), lambda i, k: (i, 0))
        scratch_shapes = [pltpu.VMEM((tb, 128), jnp.float32)]
        dim_sem = ("parallel", "arbitrary")

    out = pl.pallas_call(
        kernel,
        out_shape=jax.ShapeDtypeStruct((B, 1), out_dtype),
        grid_spec=pltpu.PrefetchScalarGridSpec(
            num_scalar_prefetch=0,
            grid=grid,
            in_specs=in_specs,
            out_specs=out_specs,
            scratch_shapes=scratch_shapes,
        ),
        compiler_params=pltpu.CompilerParams(
            dimension_semantics=dim_sem,
            vmem_limit_bytes=vmem_limit_bytes,
        ),
        cost_estimate=cost,
    )(w2d, query_embed, passage_embed)

    return out.reshape(B)


if __name__ == "__main__":
    # Config implied by the module: embedding_dim.
    B, D = 8, 128

    key = jax.random.PRNGKey(0)
    kq, kp, kq2, kp2, kw3, kq3, kp3 = jax.random.split(key, 7)

    # Test 1: module-default init (weights = ones), f32.
    query_embed = jax.random.normal(kq, (B, D), dtype=jnp.float32)
    passage_embed = jax.random.normal(kp, (B, D), dtype=jnp.float32)
    weights = jnp.ones((D,), dtype=jnp.float32)  # nn.Parameter(torch.ones(dim))

    out = jax.block_until_ready(weighted_dot_product(weights, query_embed, passage_embed))
    ref = jnp.sum(weights * query_embed * passage_embed, axis=1)
    assert out.shape == (B,)
    assert jnp.allclose(out, ref, atol=1e-5, rtol=1e-5)

    # Test 2: ragged batch (B % 8 != 0) + bf16 inputs with f32 accumulation.
    B2 = 13
    q2 = jax.random.normal(kq2, (B2, D), dtype=jnp.bfloat16)
    p2 = jax.random.normal(kp2, (B2, D), dtype=jnp.bfloat16)
    out2 = jax.block_until_ready(weighted_dot_product(weights, q2, p2))
    ref2 = jnp.sum(
        weights * q2.astype(jnp.float32) * p2.astype(jnp.float32), axis=1
    ).astype(jnp.bfloat16)
    assert out2.shape == (B2,)
    assert jnp.allclose(
        out2.astype(jnp.float32), ref2.astype(jnp.float32), atol=2e-2, rtol=2e-2
    )

    # Test 3: exercise the tiled-reduction (nd > 1) path with a non-128-multiple
    # D and ragged batch, using forced small tiles (the lane tail is masked).
    B3, D3 = 12, 320
    w3 = jax.random.normal(kw3, (D3,), dtype=jnp.float32)
    q3 = jax.random.normal(kq3, (B3, D3), dtype=jnp.float32)
    p3 = jax.random.normal(kp3, (B3, D3), dtype=jnp.float32)
    out3 = jax.block_until_ready(
        weighted_dot_product(w3, q3, p3, _force_tb=8, _force_td=128)
    )
    ref3 = jnp.sum(w3 * q3 * p3, axis=1)
    assert out3.shape == (B3,)
    assert jnp.allclose(out3, ref3, atol=1e-4, rtol=1e-4)

    print("KERNEL_OK")
</pallas_src>

<mosaic_0001>
module attributes {stable_mosaic.version = 11 : i64} {
  func.func @kernel(%arg0: i32, %arg1: memref<1x128xf32, #tpu.memory_space<vmem>>, %arg2: memref<8x128xf32, #tpu.memory_space<vmem>>, %arg3: memref<8x128xf32, #tpu.memory_space<vmem>>, %arg4: memref<8x1xf32, #tpu.memory_space<vmem>>) attributes {dimension_semantics = [#tpu.dimension_semantics<parallel>], iteration_bounds = array<i64: 1>, scalar_prefetch = 0 : i64, scratch_operands = 0 : i64, tpu.core_type = #tpu.core_type<tc>, window_params = [{pipeline_mode = #tpu.pipeline_mode<synchronous>, transform_indices = @transform_0, window_bounds = array<i64: 1, 128>}, {transform_indices = @transform_1, window_bounds = array<i64: 8, 128>}, {transform_indices = @transform_2, window_bounds = array<i64: 8, 128>}, {transform_indices = @transform_3, window_bounds = array<i64: 8, 1>}]} {
    %c0 = arith.constant 0 : index
    %c0_0 = arith.constant 0 : index
    %0 = vector.load %arg1[%c0, %c0_0] : memref<1x128xf32, #tpu.memory_space<vmem>>, vector<1x128xf32>
    %c0_1 = arith.constant 0 : index
    %c0_2 = arith.constant 0 : index
    %1 = vector.load %arg2[%c0_1, %c0_2] : memref<8x128xf32, #tpu.memory_space<vmem>>, vector<8x128xf32>
    %2 = vector.broadcast %0 : vector<1x128xf32> to vector<8x128xf32>
    %3 = arith.mulf %2, %1 : vector<8x128xf32>
    %c0_3 = arith.constant 0 : index
    %c0_4 = arith.constant 0 : index
    %4 = vector.load %arg3[%c0_3, %c0_4] : memref<8x128xf32, #tpu.memory_space<vmem>>, vector<8x128xf32>
    %5 = arith.mulf %3, %4 : vector<8x128xf32>
    %cst = arith.constant dense<0.000000e+00> : vector<8xf32>
    %6 = vector.multi_reduction <add>, %5, %cst [1] : vector<8x128xf32> to vector<8xf32>
    %7 = vector.shape_cast %6 : vector<8xf32> to vector<8x1xf32>
    %c0_5 = arith.constant 0 : index
    %c0_6 = arith.constant 0 : index
    %8 = vector.load %arg4[%c0_5, %c0_6] : memref<8x1xf32, #tpu.memory_space<vmem>>, vector<8x1xf32>
    tpu.vector_store %arg4[%c0_5, %c0_6], %7 {strides = array<i32>} : memref<8x1xf32, #tpu.memory_space<vmem>>, vector<8x1xf32>,
    return
  }
  func.func @transform_0(%arg0: i32) -> (i32, i32) {
    %c0_i32 = arith.constant 0 : i32
    %c0_i32_0 = arith.constant 0 : i32
    %c0_i32_1 = arith.constant 0 : i32
    return %c0_i32, %c0_i32_0 : i32, i32
  }
  func.func @transform_1(%arg0: i32) -> (i32, i32) {
    %c0_i32 = arith.constant 0 : i32
    %c0_i32_0 = arith.constant 0 : i32
    return %arg0, %c0_i32 : i32, i32
  }
  func.func @transform_2(%arg0: i32) -> (i32, i32) {
    %c0_i32 = arith.constant 0 : i32
    %c0_i32_0 = arith.constant 0 : i32
    return %arg0, %c0_i32 : i32, i32
  }
  func.func @transform_3(%arg0: i32) -> (i32, i32) {
    %c0_i32 = arith.constant 0 : i32
    %c0_i32_0 = arith.constant 0 : i32
    return %arg0, %c0_i32 : i32, i32
  }
}

</mosaic_0001>

<bundles_post_ra>
// kernel: tpu_custom_call.1
= control target key start
LH: loop header
LB: loop body
LE: loop exit
PB: predicated region body
PF: predicated region fallthrough
CT: control target
= control target key end

     0   :  { %8 = vsyncpa [#allocation3], 0  ;;  %s188_s0 = inlined_call_operand.hbm [shape: f32[1,128], index: 0, kind: input, shape index: {}]   ;;  %s189_s1 = inlined_call_operand.hbm [shape: f32[8,128], index: 1, kind: input, shape index: {}]   ;;  %s190_s2 = inlined_call_operand.hbm [shape: f32[8,128], index: 2, kind: input, shape index: {}]   ;;  %s191_s3 = inlined_call_operand.vmem [shape: f32[8,1], index: 3, kind: output, shape index: {}]  }
   0x1   :  { %9 = vsyncpa [#allocation5], 0  ;;  %s26_s14 = sshll.u32 %s189_s1, 4  ;;  %s153_s15 = smov [#allocation4]   ;;  %s27_s14 = int_to_ptr.hbm [resolvable:$true] %s26_s14 }
   0x2   :  { %s28_s16 = sshll.u32 %s153_s15, 4  ;;  %s15_s19 = sshll.u32 %s188_s0, 4  ;;  %s29_s16 = int_to_ptr.vmem [resolvable:$true] %s28_s16  ;;  %s16_s19 = int_to_ptr.hbm [resolvable:$true] %s15_s19 }
   0x3   :  { %31 = dma.hbm_to_vmem [thread:$0]  %s27_s14, 128, %s29_s16, [#allocation5]  }
   0x4   :  { %s154_s20 = smov [#allocation2]   ;;  %s37_s24 = sshll.u32 %s190_s2, 4  ;;  %s38_s24 = int_to_ptr.hbm [resolvable:$true] %s37_s24 }
   0x5   :  { %s17_s21 = sshll.u32 %s154_s20, 4  ;;  %s155_s1 = smov [#allocation6]   ;;  %s18_s21 = int_to_ptr.vmem [resolvable:$true] %s17_s21 }
   0x6   :  { %20 = dma.hbm_to_vmem [thread:$0]  %s16_s19, 16, %s18_s21, [#allocation3]  }
   0x7   :  { %s39_s25 = sshll.u32 %s155_s1, 4  ;;  %s40_s25 = int_to_ptr.vmem [resolvable:$true] %s39_s25 }
   0x8   :  { %42 = dma.hbm_to_vmem [thread:$0]  %s38_s24, 128, %s40_s25, [#allocation5]  }
   0x9   :  { %149 = dma.done.wait [#allocation3], 16  }
   0xa   :  { %150 = vsyncadd [#allocation3], 4294967280 }
   0xb   :  { %151 = dma.done.wait [#allocation5], 256  }
   0xc   :  { %152 = vsyncadd [#allocation5], 4294967040  ;;  %v56_v0 = vld [vmem:[#allocation4] sm:$0xff]  ;;  %v76_v1 = vld [vmem:[#allocation2] ss:$0 sm:$0xff]  ;;  %vm65_vm0 = vcmask 7168  }
   0xd   :  { %v61_v2 = vld [vmem:[#allocation6] sm:$0xff]  ;;  %v60_v3 = vmul.f32 %v76_v1, %v56_v0 }
   0xf   :  { %v62_v4 = vmul.f32 %v61_v2, %v60_v3 }
  0x11   :  { %63 = vadd.xlane.f32.xlu0 %v62_v4 }
  0x84   :  { %v64_v5 = vpop.xlane.xlu0 %63 }
  0x85   :  { %66 = vst.msk [vmem:[%s191_s3] sm:$0xff] %vm65_vm0, %v64_v5 }
  0x86   :  { %71 = vsyncpa [#allocation3], 1 }
  0x87   :  { %72 = vsyncpa [#allocation5], 1 }

</bundles_post_ra>
